<compile_context>
chip_gen: v7x
topology: tpu7x:2x2x1
jax: 0.10.0
libtpu: 0.0.40
codegen_flags: <defaults>
</compile_context>

<pallas_src>
import functools

import jax
import jax.numpy as jnp
import numpy as np
from jax import lax
from jax.experimental import pallas as pl
from jax.experimental.pallas import tpu as pltpu

_MIB = 1024 * 1024


def _masked_mse_kernel(nr, has_nr, n_rows, tile_n,
                       inp_ref, tgt_ref, lbl_ref, pos_ref, neg_ref):
    """Per-tile partial sums (single fused pos/neg pass).

    inp_ref, tgt_ref : (TILE_N, D) input-dtype tiles in VMEM
    lbl_ref          : (TILE_N, 1) int32 0/1 indicator (1 == positive row)
    pos_ref, neg_ref : (1, 1, 1) f32 partial sums for this tile
    """
    x = inp_ref[...].astype(jnp.float32)
    t = tgt_ref[...].astype(jnp.float32)
    lbl = lbl_ref[...]                                     # (TILE_N, 1) int32

    # Row-validity mask for the (possibly partial) last tile.
    row_ids = pl.program_id(0) * tile_n + lax.broadcasted_iota(
        jnp.int32, (tile_n, 1), 0)
    valid = row_ids < n_rows

    is_pos = jnp.logical_and(valid, lbl == 1)

    # Fused pass: positive rows subtract their target, negative rows subtract
    # the scalar nr.  jnp.where (never multiply-by-mask) keeps NaN/Inf in one
    # branch or in padded tail rows from leaking into the other branch —
    # matching PyTorch's boolean-indexing semantics.
    if has_nr:
        ref_vals = jnp.where(is_pos, t, jnp.float32(nr))
    else:
        ref_vals = t
    d = x - ref_vals
    sq_rows = jnp.sum(d * d, axis=1, keepdims=True)        # (TILE_N, 1), XLU

    pos_sum = jnp.sum(jnp.where(is_pos, sq_rows, 0.0), axis=0, keepdims=True)
    pos_ref[...] = pos_sum[None]                           # (1, 1, 1)

    if has_nr:  # trace-time elision when nr is falsy
        is_neg = jnp.logical_and(valid, lbl != 1)
        neg_sum = jnp.sum(jnp.where(is_neg, sq_rows, 0.0), axis=0, keepdims=True)
        neg_ref[...] = neg_sum[None]
    else:
        neg_ref[...] = jnp.zeros((1, 1, 1), jnp.float32)


def _tile_budget_bytes():
    """Generation-aware (pipelined-data budget, scoped-VMEM cap)."""
    cap = 0
    try:
        cap = int(getattr(pltpu.get_tpu_info(), "vmem_capacity_bytes", 0) or 0)
    except Exception:
        cap = 0
    if cap >= 96 * _MIB:
        # v5e / v6e: 128 MiB physical VMEM, single TensorCore, deeply DMA-bound
        # -> maximize tile size to amortize per-step overhead.
        return 24 * _MIB, 64 * _MIB
    # v7x (64 MiB physical, 2 TensorCores share the chip) or unknown backend:
    # conservative budget, leave room for the compiler's internal scratch.
    return 12 * _MIB, 24 * _MIB


def _per_row_vmem_bytes(d, itemsize):
    """Double-buffered VMEM bytes per sample row: 2 data streams (lane-padded,
    real input itemsize) + the 128-lane-padded int32 label column."""
    lanes = ((d + 127) // 128) * 128
    data = 2 * lanes * int(itemsize)        # inp + target, per buffer
    label = 128 * 4                         # (TILE_N, 1) int32 pads to 128 lanes
    return 2 * (data + label)               # x2 pipeline buffers


def _auto_tile_n(n, d, itemsize, data_budget):
    per_row = _per_row_vmem_bytes(d, itemsize)
    tile = max(8, (data_budget // per_row) // 8 * 8)
    if n <= 16:
        return n
    # Keep >= 2 tiles (>= 4 for larger N): preserves DMA/compute overlap and
    # lets the "parallel" grid axis shard across both TensorCores on v7x.
    want_tiles = 4 if n >= 64 else 2
    cap = -(-n // want_tiles)                # ceil(n / want_tiles)
    cap = max(8, -(-cap // 8) * 8)           # round up to sublane multiple
    return min(tile, cap, n)


def masked_mse_loss(inp, target, knee_label, nr, *, tile_n=None):
    """Pallas implementation of MaskedMSELoss(nr).forward(inp, target, knee_label).

    `nr` must be a static Python scalar (it is an nn.Module __init__ arg in the
    reference), since it selects the negative branch at trace time.
    """
    n, d = inp.shape

    # Classify in the label's ORIGINAL dtype (matches torch `knee_label == 1`
    # even for float labels), then pass a compact 0/1 int32 column.
    indicator = (knee_label == 1)
    labels = indicator.astype(jnp.int32).reshape(n, 1)

    has_nr = bool(nr)
    nr_val = float(nr) if has_nr else 0.0

    itemsize = jnp.dtype(inp.dtype).itemsize   # real itemsize: bf16 stays bf16
    data_budget, vmem_cap = _tile_budget_bytes()

    if tile_n is None:
        tile_n = _auto_tile_n(n, d, itemsize, data_budget)
    tile_n = int(tile_n)
    if tile_n >= n:
        tile_n = n                            # single full block (always legal)
    elif tile_n % 8 != 0:
        tile_n = max(8, (tile_n // 8) * 8)    # sublane-aligned block
        if tile_n >= n:
            tile_n = n

    num_tiles = pl.cdiv(n, tile_n)

    # Scoped-VMEM limit from the actual footprint (+ headroom), per generation.
    footprint = tile_n * _per_row_vmem_bytes(d, itemsize)
    vmem_limit = int(min(vmem_cap, max(8 * _MIB, footprint + 2 * _MIB)))

    kernel = functools.partial(_masked_mse_kernel, nr_val, has_nr, n, tile_n)

    flops = 4 * n * d                                      # sub, mul, add, select
    bytes_accessed = 2 * n * d * int(itemsize) + n * 4 + num_tiles * 8

    pos_part, neg_part = pl.pallas_call(
        kernel,
        out_shape=(jax.ShapeDtypeStruct((num_tiles, 1, 1), jnp.float32),
                   jax.ShapeDtypeStruct((num_tiles, 1, 1), jnp.float32)),
        grid=(num_tiles,),
        in_specs=[
            pl.BlockSpec((tile_n, d), lambda i: (i, 0)),
            pl.BlockSpec((tile_n, d), lambda i: (i, 0)),
            pl.BlockSpec((tile_n, 1), lambda i: (i, 0)),
        ],
        out_specs=(pl.BlockSpec((1, 1, 1), lambda i: (i, 0, 0)),
                   pl.BlockSpec((1, 1, 1), lambda i: (i, 0, 0))),
        compiler_params=pltpu.CompilerParams(
            dimension_semantics=("parallel",),
            vmem_limit_bytes=vmem_limit,
        ),
        cost_estimate=pl.CostEstimate(
            flops=flops, transcendentals=0, bytes_accessed=bytes_accessed),
    )(inp, target, labels)

    # Tiny cross-tile reduction + scalar glue in plain JAX.
    pos_sum = jnp.sum(pos_part)
    neg_sum = jnp.sum(neg_part)

    count_pos = jnp.sum(indicator.astype(jnp.float32))
    pos_cnt = count_pos * float(d)

    # diff_pos.mean(): like torch, NO NaN protection (empty positive set -> NaN).
    diff_pos_mean = pos_sum / pos_cnt

    if has_nr:
        neg_cnt = (float(n) - count_pos) * float(d)
        diff_neg_mean = neg_sum / neg_cnt
        # torch: if torch.isnan(diff_neg).any(): diff_neg = 0
        diff_neg_mean = jnp.where(jnp.isnan(diff_neg_mean), 0.0, diff_neg_mean)
    else:
        diff_neg_mean = jnp.float32(0.0)

    return diff_pos_mean + diff_neg_mean


def _reference_loss(inp, target, knee_label, nr):
    # NumPy re-implementation of the PyTorch forward (verification only).
    inp = np.asarray(inp, dtype=np.float32)
    target = np.asarray(target, dtype=np.float32)
    knee_label = np.asarray(knee_label)
    mask = knee_label == 1
    mask_neg = knee_label != 1
    diff_pos = (inp[mask, :] - target[mask, :]) ** 2
    if nr:
        diff_neg = (inp[mask_neg, :] - float(nr)) ** 2
        diff_neg = diff_neg.mean() if diff_neg.size else np.float32(np.nan)
        if np.isnan(diff_neg):
            diff_neg = 0.0
    else:
        diff_neg = 0.0
    return diff_pos.mean() + diff_neg


if __name__ == "__main__":
    key = jax.random.PRNGKey(0)
    k1, k2 = jax.random.split(key)

    N, D = 40, 32          # samples x regression-target dim (ragged vs TILE_N=16)
    NR = 0.5               # module __init__ arg (truthy -> negative branch active)

    inp = jax.random.normal(k1, (N, D), dtype=jnp.float32)
    target = jax.random.normal(k2, (N, D), dtype=jnp.float32)
    # deterministic mix of positive (==1) and negative (!=1) samples
    knee_label = (jnp.arange(N) % 3 != 0).astype(jnp.int32)

    ref = _reference_loss(np.array(inp), np.array(target), np.array(knee_label), NR)

    # Explicit tiling: 3 grid steps, last one partial.
    loss = jax.block_until_ready(masked_mse_loss(inp, target, knee_label, NR, tile_n=16))
    assert np.allclose(np.array(loss), ref, rtol=1e-5, atol=1e-5), (float(loss), ref)

    # Automatic generation-aware tiling (keeps >= 2 tiles, budget from VMEM size).
    loss_auto = jax.block_until_ready(masked_mse_loss(inp, target, knee_label, NR))
    assert np.allclose(np.array(loss_auto), ref, rtol=1e-5, atol=1e-5), (float(loss_auto), ref)

    # nr falsy: negative branch elided at trace time.
    ref0 = _reference_loss(np.array(inp), np.array(target), np.array(knee_label), 0)
    loss0 = jax.block_until_ready(masked_mse_loss(inp, target, knee_label, 0, tile_n=16))
    assert np.allclose(np.array(loss0), ref0, rtol=1e-5, atol=1e-5), (float(loss0), ref0)

    # bf16 inputs: tiles stay bf16 over HBM/VMEM, f32 accumulation in-kernel.
    inp_bf = inp.astype(jnp.bfloat16)
    tgt_bf = target.astype(jnp.bfloat16)
    ref_bf = _reference_loss(np.array(inp_bf.astype(jnp.float32)),
                             np.array(tgt_bf.astype(jnp.float32)),
                             np.array(knee_label), NR)
    loss_bf = jax.block_until_ready(masked_mse_loss(inp_bf, tgt_bf, knee_label, NR))
    assert np.allclose(np.array(loss_bf), ref_bf, rtol=1e-3, atol=1e-3), (float(loss_bf), ref_bf)

    print("KERNEL_OK")
</pallas_src>

<mosaic_0001>
module attributes {stable_mosaic.version = 11 : i64} {
  func.func @_masked_mse_kernel(%arg0: i32, %arg1: memref<16x32xf32, #tpu.memory_space<vmem>>, %arg2: memref<16x32xf32, #tpu.memory_space<vmem>>, %arg3: memref<16x1xi32, #tpu.memory_space<vmem>>, %arg4: memref<1x1x1xf32, #tpu.memory_space<vmem>>, %arg5: memref<1x1x1xf32, #tpu.memory_space<vmem>>) attributes {dimension_semantics = [#tpu.dimension_semantics<parallel>], iteration_bounds = array<i64: 3>, scalar_prefetch = 0 : i64, scratch_operands = 0 : i64, tpu.core_type = #tpu.core_type<tc>, window_params = [{transform_indices = @transform_0, window_bounds = array<i64: 16, 32>}, {transform_indices = @transform_1, window_bounds = array<i64: 16, 32>}, {transform_indices = @transform_2, window_bounds = array<i64: 16, 1>}, {transform_indices = @transform_3, window_bounds = array<i64: 1, 1, 1>}, {transform_indices = @transform_4, window_bounds = array<i64: 1, 1, 1>}]} {
    %c0 = arith.constant 0 : index
    %c0_0 = arith.constant 0 : index
    %0 = vector.load %arg1[%c0, %c0_0] : memref<16x32xf32, #tpu.memory_space<vmem>>, vector<16x32xf32>
    %c0_1 = arith.constant 0 : index
    %c0_2 = arith.constant 0 : index
    %1 = vector.load %arg2[%c0_1, %c0_2] : memref<16x32xf32, #tpu.memory_space<vmem>>, vector<16x32xf32>
    %c0_3 = arith.constant 0 : index
    %c0_4 = arith.constant 0 : index
    %2 = vector.load %arg3[%c0_3, %c0_4] : memref<16x1xi32, #tpu.memory_space<vmem>>, vector<16x1xi32>
    %c16_i32 = arith.constant 16 : i32
    %3 = arith.muli %arg0, %c16_i32 : i32
    %4 = tpu.iota {dimensions = array<i32: 0>} : vector<16x1xi32>
    %5 = vector.broadcast %3 : i32 to vector<16x1xi32>
    %6 = arith.addi %5, %4 : vector<16x1xi32>
    %c40_i32 = arith.constant 40 : i32
    %7 = vector.broadcast %c40_i32 : i32 to vector<16x1xi32>
    %8 = arith.cmpi slt, %6, %7 : vector<16x1xi32>
    %c1_i32 = arith.constant 1 : i32
    %9 = vector.broadcast %c1_i32 : i32 to vector<16x1xi32>
    %10 = arith.cmpi eq, %2, %9 : vector<16x1xi32>
    %11 = arith.andi %8, %10 : vector<16x1xi1>
    %cst = arith.constant 5.000000e-01 : f32
    %12 = vector.shape_cast %11 : vector<16x1xi1> to vector<16x1xi1>
    %13 = vector.broadcast %12 : vector<16x1xi1> to vector<16x32xi1>
    %14 = vector.broadcast %cst : f32 to vector<16x32xf32>
    %15 = arith.select %13, %1, %14 : vector<16x32xi1>, vector<16x32xf32>
    %16 = arith.subf %0, %15 : vector<16x32xf32>
    %17 = arith.mulf %16, %16 : vector<16x32xf32>
    %cst_5 = arith.constant dense<0.000000e+00> : vector<16xf32>
    %18 = vector.multi_reduction <add>, %17, %cst_5 [1] : vector<16x32xf32> to vector<16xf32>
    %19 = vector.shape_cast %18 : vector<16xf32> to vector<16x1xf32>
    %cst_6 = arith.constant 0.000000e+00 : f32
    %20 = vector.broadcast %cst_6 : f32 to vector<16x1xf32>
    %21 = arith.select %11, %19, %20 : vector<16x1xi1>, vector<16x1xf32>
    %cst_7 = arith.constant dense<0.000000e+00> : vector<1xf32>
    %22 = vector.multi_reduction <add>, %21, %cst_7 [0] : vector<16x1xf32> to vector<1xf32>
    %23 = vector.shape_cast %22 : vector<1xf32> to vector<1x1xf32>
    %24 = vector.shape_cast %23 : vector<1x1xf32> to vector<1x1x1xf32>
    %c0_8 = arith.constant 0 : index
    %c0_9 = arith.constant 0 : index
    %c0_10 = arith.constant 0 : index
    %25 = vector.load %arg4[%c0_8, %c0_9, %c0_10] : memref<1x1x1xf32, #tpu.memory_space<vmem>>, vector<1x1x1xf32>
    tpu.vector_store %arg4[%c0_8, %c0_9, %c0_10], %24 {strides = array<i32>} : memref<1x1x1xf32, #tpu.memory_space<vmem>>, vector<1x1x1xf32>,
    %c1_i32_11 = arith.constant 1 : i32
    %26 = vector.broadcast %c1_i32_11 : i32 to vector<16x1xi32>
    %27 = arith.cmpi ne, %2, %26 : vector<16x1xi32>
    %28 = arith.andi %8, %27 : vector<16x1xi1>
    %cst_12 = arith.constant 0.000000e+00 : f32
    %29 = vector.broadcast %cst_12 : f32 to vector<16x1xf32>
    %30 = arith.select %28, %19, %29 : vector<16x1xi1>, vector<16x1xf32>
    %cst_13 = arith.constant dense<0.000000e+00> : vector<1xf32>
    %31 = vector.multi_reduction <add>, %30, %cst_13 [0] : vector<16x1xf32> to vector<1xf32>
    %32 = vector.shape_cast %31 : vector<1xf32> to vector<1x1xf32>
    %33 = vector.shape_cast %32 : vector<1x1xf32> to vector<1x1x1xf32>
    %c0_14 = arith.constant 0 : index
    %c0_15 = arith.constant 0 : index
    %c0_16 = arith.constant 0 : index
    %34 = vector.load %arg5[%c0_14, %c0_15, %c0_16] : memref<1x1x1xf32, #tpu.memory_space<vmem>>, vector<1x1x1xf32>
    tpu.vector_store %arg5[%c0_14, %c0_15, %c0_16], %33 {strides = array<i32>} : memref<1x1x1xf32, #tpu.memory_space<vmem>>, vector<1x1x1xf32>,
    return
  }
  func.func @transform_0(%arg0: i32) -> (i32, i32) {
    %c0_i32 = arith.constant 0 : i32
    %c0_i32_0 = arith.constant 0 : i32
    return %arg0, %c0_i32 : i32, i32
  }
  func.func @transform_1(%arg0: i32) -> (i32, i32) {
    %c0_i32 = arith.constant 0 : i32
    %c0_i32_0 = arith.constant 0 : i32
    return %arg0, %c0_i32 : i32, i32
  }
  func.func @transform_2(%arg0: i32) -> (i32, i32) {
    %c0_i32 = arith.constant 0 : i32
    %c0_i32_0 = arith.constant 0 : i32
    return %arg0, %c0_i32 : i32, i32
  }
  func.func @transform_3(%arg0: i32) -> (i32, i32, i32) {
    %c0_i32 = arith.constant 0 : i32
    %c0_i32_0 = arith.constant 0 : i32
    %c0_i32_1 = arith.constant 0 : i32
    return %arg0, %c0_i32, %c0_i32_0 : i32, i32, i32
  }
  func.func @transform_4(%arg0: i32) -> (i32, i32, i32) {
    %c0_i32 = arith.constant 0 : i32
    %c0_i32_0 = arith.constant 0 : i32
    %c0_i32_1 = arith.constant 0 : i32
    return %arg0, %c0_i32, %c0_i32_0 : i32, i32, i32
  }
}

</mosaic_0001>

<bundles_post_ra>
// kernel: tpu_custom_call.1
= control target key start
LH: loop header
LB: loop body
LE: loop exit
PB: predicated region body
PF: predicated region fallthrough
CT: control target
= control target key end

     0   :  { %s535_s15 = smov 0   ;;  %s591_s0 = inlined_call_operand.vmem [shape: f32[40,32], index: 0, kind: input, shape index: {}]   ;;  %s592_s1 = inlined_call_operand.vmem [shape: f32[40,32], index: 1, kind: input, shape index: {}]   ;;  %s593_s2 = inlined_call_operand.vmem [shape: s32[40,1], index: 2, kind: input, shape index: {}]   ;;  %s594_s3 = inlined_call_operand.vmem [shape: f32[3,1,1], index: 3, kind: output, shape index: {0}]   ;;  %s595_s4 = inlined_call_operand.vmem [shape: f32[3,1,1], index: 4, kind: output, shape index: {1}]  }
   0x1 LB: > { %s541_s16 = sadd.s32 4294967295, %s507_s15   ;;  %p481_p0 = scmp.ge.s32.totalorder %s507_s15, 1  ;;  %s507_s15 = sphi %s535_s15, %s15_s15  }
   0x2   : > { %p212_p1 = scmp.lt.s32.totalorder %s507_s15, 4 }
   0x4   : > { %p213_p2 = pnand %p481_p0, %p212_p1 }
   0x5   : > { %s482_s17 = sshll.u32 (!%p213_p2), %s541_s16, 1  ;;  %s488_s18 = sshll.u32 (!%p213_p2), %s541_s16, 4  ;;  %v316_v0 = vlaneseq (!%p213_p2)  ;;  %v509_v1 = vmov (!%p213_p2), 0   ;;  %vm344_vm9 = vcmask (!%p213_p2), 261120   ;;  %vm353_vm13 = vcmask (!%p213_p2), 7168  }
   0x6   : > { %216 = sbr.rel (%p213_p2) target bundleno = 318 (0x13e), region = 32  ;;  %500 = vset.pattern.permute.xlu0 (!%p213_p2), %v509_v1  ;;  %p266_p3 = scmp.lt.s32.totalorder (!%p213_p2), %s482_s17, 4  ;;  %v319_v2 = vstv (!%p213_p2), %s488_s18  ;;  %vm363_vm14 = vcmask (!%p213_p2), 0  }
   0x7   : > { %v317_v3 = vshrl.u32 (!%p213_p2), %v316_v0, 7  ;;  %p303_p4 = scmp.lt.s32.totalorder (!%p213_p2), %s541_s16, 2 }
   0x9   : > { %v320_v4 = vadd.s32 (!%p213_p2), %v319_v2, %v317_v3  ;;  %v318_v5 = vadd.s32 (!%p213_p2), 8, %v317_v3 }
   0xb   : > { %vm322_vm0 = vcmp.lt.s32.totalorder (!%p213_p2), %v320_v4, 40  ;;  %v321_v6 = vadd.s32 (!%p213_p2), %v319_v2, %v318_v5 }
   0xd   : > { %s603_s17 = smov (!%p266_p3, %s482_s17), 4  ;;  %vm323_vm2 = vcmp.lt.s32.totalorder %v321_v6, 40  ;;  %s605_s16 = smov (!%p303_p4, %s541_s16), 2 }
   0xe   : > { %s483_s19 = sshll.u32 %s603_s17, 3  ;;  %s305_s5 = scalar_lea.vmem %s594_s3, %s605_s16 }
   0xf   : > { %s297_s22 = scalar_lea.vmem %s593_s2, %s483_s19  ;;  %s283_s25 = scalar_lea.vmem %s592_s1, %s483_s19 }
  0x10   : > { %v313_v7 = vld [vmem:[%s297_s22] sm:$0xff]  ;;  %v314_v8 = vld [vmem:[%s297_s22 + $0x8] sm:$0xff]  ;;  %s269_s28 = scalar_lea.vmem %s591_s0, %s483_s19  ;;  %s308_s8 = scalar_lea.vmem %s595_s4, %s605_s16 }
  0x11   : > { %vm324_vm1 = vcmp.eq.s32.totalorder %v313_v7, 1  ;;  %vm325_vm3 = vcmp.eq.s32.totalorder %v314_v8, 1  ;;  %vm365_vm6 = vcmp.ne.s32.totalorder %v313_v7, 1  ;;  %v311_v14 = vld [vmem:[%s283_s25] sm:$0xff]  ;;  %v312_v18 = vld [vmem:[%s283_s25 + $0x8] sm:$0xff]  ;;  %vm366_vm11 = vcmp.ne.s32.totalorder %v314_v8, 1 }
  0x12   : > { %vm550_vm4 = vmand %vm322_vm0, %vm324_vm1  ;;  %v309_v16 = vld [vmem:[%s269_s28] sm:$0xff]  ;;  %v310_v21 = vld [vmem:[%s269_s28 + $0x8] sm:$0xff] }
  0x13   : > { %v328_v10 = vsel %vm550_vm4, 1, %v509_v1  ;;  %vm557_vm5 = vmand %vm323_vm2, %vm325_vm3 }
  0x14   : > { %331 = vperm.xlu0 %500, %v328_v10   ;;  %v329_v12 = vsel %vm557_vm5, 1, %v509_v1  ;;  %vm563_vm7 = vmand %vm322_vm0, %vm365_vm6 }
  0x15   : > { %vm368_vm12 = vmand %vm323_vm2, %vm366_vm11 }
  0x18   : > { %334 = vperm.xlu0 %500, %v329_v12  }
  0x93   : > { %v332_v15 = vpop.permute.xlu0 %331 }
  0x94   : > { %vm336_vm8 = vcmp.eq.s32.totalorder %v332_v15, 1 }
  0x95   : > { %v338_v17 = vsel %vm336_vm8, %v311_v14, 0.5 }
  0x96   : > { %v340_v19 = vsub.f32 %v309_v16, %v338_v17 }
  0x97   : > { %v335_v20 = vpop.permute.xlu0 %334 }
  0x98   : > { %vm337_vm10 = vcmp.eq.s32.totalorder %v335_v20, 1  ;;  %v342_v22 = vmul.f32 %v340_v19, %v340_v19 }
  0x99   : > { %v339_v23 = vsel %vm337_vm10, %v312_v18, 0.5 }
  0x9a   : > { %v341_v24 = vsub.f32 %v310_v21, %v339_v23  ;;  %v345_v25 = vsel %vm344_vm9, %v342_v22, 0.0 }
  0x9b   : > { %346 = vadd.xlane.f32.xlu1 %v345_v25 }
  0x9c   : > { %v343_v26 = vmul.f32 %v341_v24, %v341_v24 }
  0x9e   : > { %v348_v27 = vsel %vm344_vm9, %v343_v26, 0.0 }
  0x9f   : > { %349 = vadd.xlane.f32.xlu1 %v348_v27 }
 0x128   : > { %v347_v28 = vpop.xlane.xlu1 %346 }
 0x129   : > { %v351_v29 = vsel %vm550_vm4, %v347_v28, 0.0  ;;  %v369_v30 = vsel %vm563_vm7, %v347_v28, 0.0 }
 0x12a   : > { %v354_v34 = vsel %vm353_vm13, %v351_v29, 0.0  ;;  %v371_v35 = vsel %vm353_vm13, %v369_v30, 0.0 }
 0x12c   : > { %v350_v31 = vpop.xlane.xlu1 %349 }
 0x12d   : > { %v352_v32 = vsel %vm557_vm5, %v350_v31, 0.0  ;;  %v370_v33 = vsel %vm368_vm12, %v350_v31, 0.0 }
 0x12e   : > { %v355_v36 = vsel %vm353_vm13, %v352_v32, 0.0  ;;  %v372_v37 = vsel %vm353_vm13, %v370_v33, 0.0 }
 0x12f   : > { %v356_v38 = vadd.f32 %v355_v36, %v354_v34  ;;  %v373_v39 = vadd.f32 %v372_v37, %v371_v35 }
 0x131   : > { %v357_v40 = vrot.slane %v356_v38, 4  ;;  %v374_v41 = vrot.slane %v373_v39, 4 }
 0x133   : > { %v358_v42 = vadd.f32 %v357_v40, %v356_v38  ;;  %v375_v43 = vadd.f32 %v374_v41, %v373_v39 }
 0x135   : > { %v359_v44 = vrot.slane %v358_v42, 2  ;;  %v376_v45 = vrot.slane %v375_v43, 2 }
 0x137   : > { %v360_v46 = vadd.f32 %v359_v44, %v358_v42  ;;  %v377_v47 = vadd.f32 %v376_v45, %v375_v43 }
 0x139   : > { %v361_v48 = vrot.slane %v360_v46, 1  ;;  %v378_v49 = vrot.slane %v377_v47, 1 }
 0x13b   : > { %v362_v50 = vadd.f32 %v361_v48, %v360_v46  ;;  %v379_v51 = vadd.f32 %v378_v49, %v377_v47 }
 0x13d   : > { %364 = vst.msk [vmem:[%s305_s5] sm:$0x1] %vm363_vm14, %v362_v50  ;;  %380 = vst.msk [vmem:[%s308_s8] sm:$0x1] %vm363_vm14, %v379_v51 }
 0x13e PF: > { %s15_s15 = sadd.s32 1, %s507_s15  }
 0x13f   : > { %p12_p5 = scmp.ge.s32.totalorder %s15_s15, 5  }
 0x141   :  { %14 = sbr.rel (!%p12_p5) target bundleno = 1 (0x1), region = 80 }

</bundles_post_ra>
